<compile_context>
chip_gen: v7x
topology: tpu7x:2x2x1
jax: 0.10.0
libtpu: 0.0.40
codegen_flags: <defaults>
</compile_context>

<pallas_src>
import functools
import itertools
from collections import defaultdict

import numpy as np
import jax
import jax.numpy as jnp
from jax.experimental import pallas as pl
from jax.experimental.pallas import tpu as pltpu

IGNORE_INDEX = -1
_NEG = -1e30          # finite "minus infinity" for masking (avoids inf/NaN corners)
LANE_BLOCK = 128      # each task owns one 128-lane block of the logits/probs slab
MAX_TILE_B = 512      # batch tile; fits v5e's 16 MiB scoped VMEM with big headroom


def _round_up(x, m):
    return ((x + m - 1) // m) * m


# ----------------------------------------------------------------------------
# Fused forward kernel: encoder + all heads + per-task softmax + per-task CE
# ----------------------------------------------------------------------------
def _fused_forward_kernel(x_ref, w_in_ref, b_in_ref, w_hd_ref, b_hd_ref,
                          labels_ref, probs_ref, lsum_ref, *, class_sizes):
    # shared encoder: (TB, D_in)bf16 @ (D_in, H)bf16 -> f32 acc, +bias, ReLU
    h = jnp.dot(x_ref[...], w_in_ref[...], preferred_element_type=jnp.float32)
    h = jnp.maximum(h + b_in_ref[...], 0.0)

    # all task heads in one MXU pass: (TB, H)bf16 @ (H, n_tasks*128)bf16 -> f32
    logits = jnp.dot(h.astype(jnp.bfloat16), w_hd_ref[...],
                     preferred_element_type=jnp.float32) + b_hd_ref[...]

    tb = logits.shape[0]
    labels = labels_ref[...]                                          # (TB, n_tasks) i32
    col = jax.lax.broadcasted_iota(jnp.int32, (tb, LANE_BLOCK), 1)    # hoisted once

    for t, nc in enumerate(class_sizes):              # static python loop over tasks
        blk = slice(t * LANE_BLOCK, (t + 1) * LANE_BLOCK)   # lane-aligned static slice
        lg = logits[:, blk]                                  # (TB, 128) f32
        valid = col < nc                                     # padding-lane mask
        lg_m = jnp.where(valid, lg, _NEG)
        m = jnp.max(lg_m, axis=-1, keepdims=True)            # (TB, 1)
        e = jnp.exp(lg_m - m)                                # padding lanes underflow -> 0
        s = jnp.sum(e, axis=-1, keepdims=True)               # (TB, 1)

        # per-task softmax into its own 128-lane block (unmasked lane-dense store)
        probs_ref[:, blk] = e * pl.reciprocal(s, approx=True)

        # masked-mean CE numerator for this tile, reusing m / s for logsumexp
        lab = labels[:, t:t + 1]                             # (TB, 1) int32
        active = (lab != IGNORE_INDEX).astype(jnp.float32)
        pick = (col == jnp.maximum(lab, 0)) & valid
        picked = jnp.sum(jnp.where(pick, lg, 0.0), axis=-1, keepdims=True)
        nll = (m + jnp.log(s) - picked) * active
        lsum_ref[0, t] = jnp.sum(nll)                        # per-tile partial sum (SMEM)


def build_fused_forward(d_in, hidden, class_sizes):
    """Returns (jitted fused forward fn, param padder, per-task (offset, n_classes))."""
    n_tasks = len(class_sizes)
    h_pad = _round_up(hidden, 128)
    c_pad = LANE_BLOCK * n_tasks
    task_slices = tuple((t * LANE_BLOCK, int(c)) for t, c in enumerate(class_sizes))

    kernel = functools.partial(_fused_forward_kernel,
                               class_sizes=tuple(int(c) for c in class_sizes))

    def pad_params(w_in, b_in, head_ws, head_bs):
        """bf16 weights, zero-padded once at build time into lane-aligned slabs."""
        w_in_p = jnp.zeros((d_in, h_pad), jnp.bfloat16)
        w_in_p = w_in_p.at[:, :hidden].set(jnp.asarray(w_in, jnp.bfloat16))
        b_in_p = jnp.zeros((1, h_pad), jnp.float32).at[:, :hidden].set(b_in)
        w_hd_p = jnp.zeros((h_pad, c_pad), jnp.bfloat16)
        b_hd_p = jnp.zeros((1, c_pad), jnp.float32)
        for t, (w, b) in enumerate(zip(head_ws, head_bs)):
            nc = int(w.shape[1])
            off = t * LANE_BLOCK
            w_hd_p = w_hd_p.at[:hidden, off:off + nc].set(jnp.asarray(w, jnp.bfloat16))
            b_hd_p = b_hd_p.at[:, off:off + nc].set(b)
        return w_in_p, b_in_p, w_hd_p, b_hd_p

    @jax.jit
    def fused_forward(x, labels_bt, w_in_p, b_in_p, w_hd_p, b_hd_p):
        bsz = x.shape[0]
        tile_b = min(MAX_TILE_B, _round_up(bsz, 16))   # mult of 16 (bf16 sublane pack)
        b_pad = _round_up(bsz, tile_b)
        num_tiles = b_pad // tile_b

        # batch padded to the tile; D_in left unpadded (full-array last dim is legal)
        x_p = jnp.zeros((b_pad, d_in), jnp.bfloat16).at[:bsz].set(x.astype(jnp.bfloat16))
        lab_p = jnp.full((b_pad, n_tasks), IGNORE_INDEX, jnp.int32).at[:bsz].set(labels_bt)

        probs, loss_sums = pl.pallas_call(
            kernel,
            out_shape=(
                jax.ShapeDtypeStruct((b_pad, c_pad), jnp.float32),
                jax.ShapeDtypeStruct((num_tiles, n_tasks), jnp.float32),
            ),
            grid=(num_tiles,),
            in_specs=[
                pl.BlockSpec((tile_b, d_in), lambda i: (i, 0)),      # x tile
                pl.BlockSpec((d_in, h_pad), lambda i: (0, 0)),       # w_in  (resident)
                pl.BlockSpec((1, h_pad), lambda i: (0, 0)),          # b_in  (resident)
                pl.BlockSpec((h_pad, c_pad), lambda i: (0, 0)),      # w_heads (resident)
                pl.BlockSpec((1, c_pad), lambda i: (0, 0)),          # b_heads (resident)
                pl.BlockSpec((tile_b, n_tasks), lambda i: (i, 0)),   # labels tile
            ],
            out_specs=(
                pl.BlockSpec((tile_b, c_pad), lambda i: (i, 0)),     # probs tile (lane-dense)
                pl.BlockSpec((1, n_tasks), lambda i: (i, 0),
                             memory_space=pltpu.MemorySpace.SMEM),   # per-tile loss sums
            ),
            compiler_params=pltpu.CompilerParams(
                dimension_semantics=("parallel",)),
        )(x_p, w_in_p, b_in_p, w_hd_p, b_hd_p, lab_p)

        # masked-mean finalize: per-tile partials -> per-task loss (tiny XLA epilogue)
        counts = jnp.sum((labels_bt != IGNORE_INDEX).astype(jnp.float32), axis=0)
        losses = jnp.sum(loss_sums, axis=0) / jnp.maximum(counts, 1.0)
        return probs, losses

    return fused_forward, pad_params, task_slices


# ----------------------------------------------------------------------------
# Modules (stand-ins for nn.Module entries in module_pool; hold params only,
# the compute is fused into the single kernel above)
# ----------------------------------------------------------------------------
class LinearReLUModule:
    def __init__(self, w, b):
        self.w, self.b = w, b


class SoftmaxHeadModule:
    def __init__(self, w, b):
        self.w, self.b = w, b


# ----------------------------------------------------------------------------
# EmmentalModel equivalent (task registration + forward() semantics)
# ----------------------------------------------------------------------------
class EmmentalModelPallas:
    def __init__(self, name=None):
        self.name = name if name is not None else type(self).__name__
        self.module_pool = {}
        self.task_names = set()
        self.task_flows = {}
        self.weights = {}
        self._task_order = []
        self._head_modules = {}
        self._fused = None  # compiled lazily

    def add_task(self, name, module_pool, task_flow, weight=1.0):
        for key, mod in module_pool.items():
            if key not in self.module_pool:          # shared-module reuse
                self.module_pool[key] = mod
        self.task_names.add(name)
        self.task_flows[name] = task_flow
        self.weights[name] = weight
        self._task_order.append(name)
        head_key = task_flow[-1]["module"]           # final action = task head
        self._head_modules[name] = self.module_pool[head_key]
        self._fused = None                           # needs re-fusing

    def _compile(self):
        enc_key = self.task_flows[self._task_order[0]][0]["module"]
        enc = self.module_pool[enc_key]
        d_in, hidden = int(enc.w.shape[0]), int(enc.w.shape[1])
        heads = [self._head_modules[t] for t in self._task_order]
        class_sizes = [int(h.w.shape[1]) for h in heads]
        fused, pad_params, task_slices = build_fused_forward(d_in, hidden, class_sizes)
        params = pad_params(enc.w, enc.b, [h.w for h in heads], [h.b for h in heads])
        self._fused = (fused, params, task_slices, class_sizes)

    def forward(self, uids, X_dict, Y_dict, task_to_label_dict):
        if self._fused is None:
            self._compile()
        fused, params, task_slices, _ = self._fused

        x = X_dict["data"]
        bsz = int(x.shape[0])

        # labels for ALL registered tasks as one (B, n_tasks) slab; missing -> ignored
        labels_np = np.full((bsz, len(self._task_order)), IGNORE_INDEX, np.int32)
        for ti, tname in enumerate(self._task_order):
            if tname in task_to_label_dict:
                labels_np[:, ti] = np.asarray(Y_dict[task_to_label_dict[tname]])

        # single fused kernel, single host transfer
        probs_dev, losses_dev = fused(x, jnp.asarray(labels_np), *params)
        jax.block_until_ready((probs_dev, losses_dev))
        probs_np = np.asarray(probs_dev)
        losses_np = np.asarray(losses_dev)

        uid_dict = defaultdict(list)
        loss_dict = defaultdict(float)
        prob_dict = defaultdict(list)
        gold_dict = defaultdict(list)

        for ti, tname in enumerate(self._task_order):
            if tname not in task_to_label_dict:
                continue
            y_np = labels_np[:, ti]
            active = y_np != IGNORE_INDEX
            if active.any():
                off, nc = task_slices[ti]
                uid_dict[tname] = [*itertools.compress(uids, active)]
                loss_dict[tname] = losses_np[ti]
                prob_dict[tname] = probs_np[:bsz, off:off + nc][active]
                gold_dict[tname] = y_np[active]
        return uid_dict, loss_dict, prob_dict, gold_dict


# ----------------------------------------------------------------------------
# Build a concrete 2-task model with deterministic parameters
# ----------------------------------------------------------------------------
def build_model(key, d_in, hidden, c1, c2):
    k1, k2, k3 = jax.random.split(key, 3)
    w_in = (jax.random.normal(k1, (d_in, hidden), jnp.float32) / np.sqrt(d_in)).astype(jnp.float32)
    b_in = jnp.zeros((1, hidden), jnp.float32)
    w_h1 = (jax.random.normal(k2, (hidden, c1), jnp.float32) / np.sqrt(hidden)).astype(jnp.float32)
    b_h1 = jnp.zeros((1, c1), jnp.float32)
    w_h2 = (jax.random.normal(k3, (hidden, c2), jnp.float32) / np.sqrt(hidden)).astype(jnp.float32)
    b_h2 = jnp.zeros((1, c2), jnp.float32)

    shared_input = LinearReLUModule(w_in, b_in)
    model = EmmentalModelPallas(name="emmental_pallas")
    model.add_task(
        "task1",
        module_pool={"input_module": shared_input,
                     "task1_head": SoftmaxHeadModule(w_h1, b_h1)},
        task_flow=[
            {"name": "input", "module": "input_module", "inputs": [("_input_", "data")]},
            {"name": "task1_head", "module": "task1_head", "inputs": [("input", 0)]},
        ])
    model.add_task(
        "task2",
        module_pool={"input_module": shared_input,   # shared, reused from pool
                     "task2_head": SoftmaxHeadModule(w_h2, b_h2)},
        task_flow=[
            {"name": "input", "module": "input_module", "inputs": [("_input_", "data")]},
            {"name": "task2_head", "module": "task2_head", "inputs": [("input", 0)]},
        ])
    return model


def _reference(x, enc_w, enc_b, head_params, labels):
    """Pure-numpy f32 reference of the fused forward (module semantics)."""
    x = np.asarray(x, np.float32)
    h = np.maximum(x @ np.asarray(enc_w) + np.asarray(enc_b), 0.0)
    out = []
    for (w, b), y in zip(head_params, labels):
        y = np.asarray(y)
        logits = h @ np.asarray(w) + np.asarray(b)
        m = logits.max(axis=-1, keepdims=True)
        e = np.exp(logits - m)
        probs = e / e.sum(axis=-1, keepdims=True)
        lse = m + np.log(e.sum(axis=-1, keepdims=True))
        picked = np.take_along_axis(logits, np.maximum(y, 0)[:, None], axis=-1)
        nll = (lse - picked)[:, 0]
        act = y != IGNORE_INDEX
        loss = float(nll[act].mean())
        out.append((probs, loss, act))
    return out


if __name__ == "__main__":
    B, D_IN, HIDDEN, C1, C2 = 8, 32, 64, 4, 8

    key = jax.random.PRNGKey(0)
    k_model, k_x, k_y1, k_y2 = jax.random.split(key, 4)

    model = build_model(k_model, D_IN, HIDDEN, C1, C2)

    x = jax.random.normal(k_x, (B, D_IN), jnp.float32)
    y1 = jax.random.randint(k_y1, (B,), 0, C1, jnp.int32).at[1].set(IGNORE_INDEX)
    y2 = jax.random.randint(k_y2, (B,), 0, C2, jnp.int32).at[5].set(IGNORE_INDEX)

    uids = [f"uid_{i}" for i in range(B)]
    X_dict = {"data": x}
    Y_dict = {"label1": y1, "label2": y2}
    task_to_label_dict = {"task1": "label1", "task2": "label2"}

    uid_dict, loss_dict, prob_dict, gold_dict = model.forward(
        uids, X_dict, Y_dict, task_to_label_dict)

    # pure-numpy reference check (f32 module semantics; bf16 MXU inputs -> loose tol)
    enc = model.module_pool["input_module"]
    h1 = model.module_pool["task1_head"]
    h2 = model.module_pool["task2_head"]
    ref = _reference(x, enc.w, enc.b, [(h1.w, h1.b), (h2.w, h2.b)], [y1, y2])

    y_all = (np.asarray(y1), np.asarray(y2))
    n_classes = (C1, C2)
    for ti, (task, (ref_probs, ref_loss, ref_act)) in enumerate(
            zip(("task1", "task2"), ref)):
        n_act = int(ref_act.sum())
        p = prob_dict[task]
        assert p.shape == (n_act, n_classes[ti])
        assert np.allclose(p.sum(axis=-1), 1.0, atol=5e-3)            # approx recip
        assert np.allclose(p, ref_probs[ref_act], atol=3e-2)          # bf16 MXU inputs
        assert np.isfinite(float(loss_dict[task]))
        assert np.allclose(float(loss_dict[task]), ref_loss, rtol=3e-2, atol=3e-2)
        assert len(uid_dict[task]) == n_act
        assert np.array_equal(gold_dict[task], y_all[ti][ref_act])

    print("KERNEL_OK")
</pallas_src>

<mosaic_0001>
module attributes {stable_mosaic.version = 11 : i64} {
  func.func @_fused_forward_kernel(%arg0: i32, %arg1: memref<16x32xbf16, #tpu.memory_space<vmem>>, %arg2: memref<32x128xbf16, #tpu.memory_space<vmem>>, %arg3: memref<1x128xf32, #tpu.memory_space<vmem>>, %arg4: memref<128x256xbf16, #tpu.memory_space<vmem>>, %arg5: memref<1x256xf32, #tpu.memory_space<vmem>>, %arg6: memref<16x2xi32, #tpu.memory_space<vmem>>, %arg7: memref<16x256xf32, #tpu.memory_space<vmem>>, %arg8: memref<1x2xf32, #tpu.memory_space<smem>>) attributes {dimension_semantics = [#tpu.dimension_semantics<parallel>], iteration_bounds = array<i64: 1>, scalar_prefetch = 0 : i64, scratch_operands = 0 : i64, tpu.core_type = #tpu.core_type<tc>, window_params = [{transform_indices = @transform_0, window_bounds = array<i64: 16, 32>}, {pipeline_mode = #tpu.pipeline_mode<synchronous>, transform_indices = @transform_1, window_bounds = array<i64: 32, 128>}, {pipeline_mode = #tpu.pipeline_mode<synchronous>, transform_indices = @transform_2, window_bounds = array<i64: 1, 128>}, {pipeline_mode = #tpu.pipeline_mode<synchronous>, transform_indices = @transform_3, window_bounds = array<i64: 128, 256>}, {pipeline_mode = #tpu.pipeline_mode<synchronous>, transform_indices = @transform_4, window_bounds = array<i64: 1, 256>}, {transform_indices = @transform_5, window_bounds = array<i64: 16, 2>}, {transform_indices = @transform_6, window_bounds = array<i64: 16, 256>}, {transform_indices = @transform_7, window_bounds = array<i64: 1, 2>}]} {
    %c0 = arith.constant 0 : index
    %c0_0 = arith.constant 0 : index
    %0 = vector.load %arg1[%c0, %c0_0] : memref<16x32xbf16, #tpu.memory_space<vmem>>, vector<16x32xbf16>
    %c0_1 = arith.constant 0 : index
    %c0_2 = arith.constant 0 : index
    %1 = vector.load %arg2[%c0_1, %c0_2] : memref<32x128xbf16, #tpu.memory_space<vmem>>, vector<32x128xbf16>
    %cst = arith.constant dense<0.000000e+00> : vector<16x128xf32>
    %2 = tpu.matmul %0, %1, %cst {dimension_numbers = #tpu.dot_dimension_numbers<[1], [0], [0], [1], [0, 0, 1, 1], [], []>} : vector<16x32xbf16>, vector<32x128xbf16>, vector<16x128xf32> -> vector<16x128xf32>
    %c0_3 = arith.constant 0 : index
    %c0_4 = arith.constant 0 : index
    %3 = vector.load %arg3[%c0_3, %c0_4] : memref<1x128xf32, #tpu.memory_space<vmem>>, vector<1x128xf32>
    %4 = vector.broadcast %3 : vector<1x128xf32> to vector<16x128xf32>
    %5 = arith.addf %2, %4 : vector<16x128xf32>
    %cst_5 = arith.constant 0.000000e+00 : f32
    %6 = vector.broadcast %cst_5 : f32 to vector<16x128xf32>
    %7 = arith.maximumf %5, %6 : vector<16x128xf32>
    %8 = arith.truncf %7 : vector<16x128xf32> to vector<16x128xbf16>
    %c0_6 = arith.constant 0 : index
    %c0_7 = arith.constant 0 : index
    %9 = vector.load %arg4[%c0_6, %c0_7] : memref<128x256xbf16, #tpu.memory_space<vmem>>, vector<128x256xbf16>
    %cst_8 = arith.constant dense<0.000000e+00> : vector<16x256xf32>
    %10 = tpu.matmul %8, %9, %cst_8 {dimension_numbers = #tpu.dot_dimension_numbers<[1], [0], [0], [1], [0, 0, 1, 1], [], []>} : vector<16x128xbf16>, vector<128x256xbf16>, vector<16x256xf32> -> vector<16x256xf32>
    %c0_9 = arith.constant 0 : index
    %c0_10 = arith.constant 0 : index
    %11 = vector.load %arg5[%c0_9, %c0_10] : memref<1x256xf32, #tpu.memory_space<vmem>>, vector<1x256xf32>
    %12 = vector.broadcast %11 : vector<1x256xf32> to vector<16x256xf32>
    %13 = arith.addf %10, %12 : vector<16x256xf32>
    %c0_11 = arith.constant 0 : index
    %c0_12 = arith.constant 0 : index
    %14 = vector.load %arg6[%c0_11, %c0_12] : memref<16x2xi32, #tpu.memory_space<vmem>>, vector<16x2xi32>
    %15 = tpu.iota {dimensions = array<i32: 1>} : vector<16x128xi32>
    %16 = vector.extract_strided_slice %13 {offsets = [0, 0], sizes = [16, 128], strides = [1, 1]} : vector<16x256xf32> to vector<16x128xf32>
    %c4_i32 = arith.constant 4 : i32
    %17 = vector.broadcast %c4_i32 : i32 to vector<16x128xi32>
    %18 = arith.cmpi slt, %15, %17 : vector<16x128xi32>
    %cst_13 = arith.constant -1.000000e+30 : f32
    %19 = vector.broadcast %cst_13 : f32 to vector<16x128xf32>
    %20 = arith.select %18, %16, %19 : vector<16x128xi1>, vector<16x128xf32>
    %cst_14 = arith.constant dense<0xFF800000> : vector<16xf32>
    %21 = vector.multi_reduction <maximumf>, %20, %cst_14 [1] : vector<16x128xf32> to vector<16xf32>
    %22 = vector.shape_cast %21 : vector<16xf32> to vector<16x1xf32>
    %23 = vector.broadcast %22 : vector<16x1xf32> to vector<16x128xf32>
    %24 = arith.subf %20, %23 : vector<16x128xf32>
    %25 = math.exp %24 : vector<16x128xf32>
    %cst_15 = arith.constant dense<0.000000e+00> : vector<16xf32>
    %26 = vector.multi_reduction <add>, %25, %cst_15 [1] : vector<16x128xf32> to vector<16xf32>
    %27 = vector.shape_cast %26 : vector<16xf32> to vector<16x1xf32>
    %28 = tpu.reciprocal %27 {approx = true} : vector<16x1xf32> -> vector<16x1xf32>
    %29 = vector.broadcast %28 : vector<16x1xf32> to vector<16x128xf32>
    %30 = arith.mulf %25, %29 : vector<16x128xf32>
    %c0_16 = arith.constant 0 : index
    %c0_17 = arith.constant 0 : index
    %31 = vector.load %arg7[%c0_16, %c0_17] : memref<16x256xf32, #tpu.memory_space<vmem>>, vector<16x128xf32>
    tpu.vector_store %arg7[%c0_16, %c0_17], %30 {strides = array<i32>} : memref<16x256xf32, #tpu.memory_space<vmem>>, vector<16x128xf32>,
    %32 = vector.extract_strided_slice %14 {offsets = [0, 0], sizes = [16, 1], strides = [1, 1]} : vector<16x2xi32> to vector<16x1xi32>
    %c-1_i32 = arith.constant -1 : i32
    %33 = vector.broadcast %c-1_i32 : i32 to vector<16x1xi32>
    %34 = arith.cmpi ne, %32, %33 : vector<16x1xi32>
    %35 = arith.extui %34 : vector<16x1xi1> to vector<16x1xi32>
    %36 = arith.sitofp %35 : vector<16x1xi32> to vector<16x1xf32>
    %c0_i32 = arith.constant 0 : i32
    %37 = vector.broadcast %c0_i32 : i32 to vector<16x1xi32>
    %38 = arith.maxsi %32, %37 : vector<16x1xi32>
    %39 = vector.broadcast %38 : vector<16x1xi32> to vector<16x128xi32>
    %40 = arith.cmpi eq, %15, %39 : vector<16x128xi32>
    %41 = arith.andi %40, %18 : vector<16x128xi1>
    %cst_18 = arith.constant 0.000000e+00 : f32
    %42 = vector.broadcast %cst_18 : f32 to vector<16x128xf32>
    %43 = arith.select %41, %16, %42 : vector<16x128xi1>, vector<16x128xf32>
    %cst_19 = arith.constant dense<0.000000e+00> : vector<16xf32>
    %44 = vector.multi_reduction <add>, %43, %cst_19 [1] : vector<16x128xf32> to vector<16xf32>
    %45 = vector.shape_cast %44 : vector<16xf32> to vector<16x1xf32>
    %46 = math.log %27 : vector<16x1xf32>
    %47 = arith.addf %22, %46 : vector<16x1xf32>
    %48 = arith.subf %47, %45 : vector<16x1xf32>
    %49 = arith.mulf %48, %36 : vector<16x1xf32>
    %50 = vector.shape_cast %49 : vector<16x1xf32> to vector<1x16x1xf32>
    %cst_20 = arith.constant dense<0.000000e+00> : vector<1xf32>
    %51 = vector.multi_reduction <add>, %50, %cst_20 [1, 2] : vector<1x16x1xf32> to vector<1xf32>
    %52 = vector.shape_cast %51 : vector<1xf32> to vector<1x1x1xf32>
    %53 = vector.extract %52[0, 0, 0] : f32 from vector<1x1x1xf32>
    %c0_21 = arith.constant 0 : index
    %c0_22 = arith.constant 0 : index
    %54 = memref.load %arg8[%c0_21, %c0_22] : memref<1x2xf32, #tpu.memory_space<smem>>
    memref.store %53, %arg8[%c0_21, %c0_22] : memref<1x2xf32, #tpu.memory_space<smem>>
    %55 = vector.extract_strided_slice %13 {offsets = [0, 128], sizes = [16, 128], strides = [1, 1]} : vector<16x256xf32> to vector<16x128xf32>
    %c8_i32 = arith.constant 8 : i32
    %56 = vector.broadcast %c8_i32 : i32 to vector<16x128xi32>
    %57 = arith.cmpi slt, %15, %56 : vector<16x128xi32>
    %cst_23 = arith.constant -1.000000e+30 : f32
    %58 = vector.broadcast %cst_23 : f32 to vector<16x128xf32>
    %59 = arith.select %57, %55, %58 : vector<16x128xi1>, vector<16x128xf32>
    %cst_24 = arith.constant dense<0xFF800000> : vector<16xf32>
    %60 = vector.multi_reduction <maximumf>, %59, %cst_24 [1] : vector<16x128xf32> to vector<16xf32>
    %61 = vector.shape_cast %60 : vector<16xf32> to vector<16x1xf32>
    %62 = vector.broadcast %61 : vector<16x1xf32> to vector<16x128xf32>
    %63 = arith.subf %59, %62 : vector<16x128xf32>
    %64 = math.exp %63 : vector<16x128xf32>
    %cst_25 = arith.constant dense<0.000000e+00> : vector<16xf32>
    %65 = vector.multi_reduction <add>, %64, %cst_25 [1] : vector<16x128xf32> to vector<16xf32>
    %66 = vector.shape_cast %65 : vector<16xf32> to vector<16x1xf32>
    %67 = tpu.reciprocal %66 {approx = true} : vector<16x1xf32> -> vector<16x1xf32>
    %68 = vector.broadcast %67 : vector<16x1xf32> to vector<16x128xf32>
    %69 = arith.mulf %64, %68 : vector<16x128xf32>
    %c0_26 = arith.constant 0 : index
    %c128 = arith.constant 128 : index
    %70 = vector.load %arg7[%c0_26, %c128] : memref<16x256xf32, #tpu.memory_space<vmem>>, vector<16x128xf32>
    tpu.vector_store %arg7[%c0_26, %c128], %69 {strides = array<i32>} : memref<16x256xf32, #tpu.memory_space<vmem>>, vector<16x128xf32>,
    %71 = vector.extract_strided_slice %14 {offsets = [0, 1], sizes = [16, 1], strides = [1, 1]} : vector<16x2xi32> to vector<16x1xi32>
    %c-1_i32_27 = arith.constant -1 : i32
    %72 = vector.broadcast %c-1_i32_27 : i32 to vector<16x1xi32>
    %73 = arith.cmpi ne, %71, %72 : vector<16x1xi32>
    %74 = arith.extui %73 : vector<16x1xi1> to vector<16x1xi32>
    %75 = arith.sitofp %74 : vector<16x1xi32> to vector<16x1xf32>
    %c0_i32_28 = arith.constant 0 : i32
    %76 = vector.broadcast %c0_i32_28 : i32 to vector<16x1xi32>
    %77 = arith.maxsi %71, %76 : vector<16x1xi32>
    %78 = vector.broadcast %77 : vector<16x1xi32> to vector<16x128xi32>
    %79 = arith.cmpi eq, %15, %78 : vector<16x128xi32>
    %80 = arith.andi %79, %57 : vector<16x128xi1>
    %cst_29 = arith.constant 0.000000e+00 : f32
    %81 = vector.broadcast %cst_29 : f32 to vector<16x128xf32>
    %82 = arith.select %80, %55, %81 : vector<16x128xi1>, vector<16x128xf32>
    %cst_30 = arith.constant dense<0.000000e+00> : vector<16xf32>
    %83 = vector.multi_reduction <add>, %82, %cst_30 [1] : vector<16x128xf32> to vector<16xf32>
    %84 = vector.shape_cast %83 : vector<16xf32> to vector<16x1xf32>
    %85 = math.log %66 : vector<16x1xf32>
    %86 = arith.addf %61, %85 : vector<16x1xf32>
    %87 = arith.subf %86, %84 : vector<16x1xf32>
    %88 = arith.mulf %87, %75 : vector<16x1xf32>
    %89 = vector.shape_cast %88 : vector<16x1xf32> to vector<1x16x1xf32>
    %cst_31 = arith.constant dense<0.000000e+00> : vector<1xf32>
    %90 = vector.multi_reduction <add>, %89, %cst_31 [1, 2] : vector<1x16x1xf32> to vector<1xf32>
    %91 = vector.shape_cast %90 : vector<1xf32> to vector<1x1x1xf32>
    %92 = vector.extract %91[0, 0, 0] : f32 from vector<1x1x1xf32>
    %c0_32 = arith.constant 0 : index
    %c1 = arith.constant 1 : index
    %93 = memref.load %arg8[%c0_32, %c1] : memref<1x2xf32, #tpu.memory_space<smem>>
    memref.store %92, %arg8[%c0_32, %c1] : memref<1x2xf32, #tpu.memory_space<smem>>
    return
  }
  func.func @transform_0(%arg0: i32) -> (i32, i32) {
    %c0_i32 = arith.constant 0 : i32
    %c0_i32_0 = arith.constant 0 : i32
    return %arg0, %c0_i32 : i32, i32
  }
  func.func @transform_1(%arg0: i32) -> (i32, i32) {
    %c0_i32 = arith.constant 0 : i32
    %c0_i32_0 = arith.constant 0 : i32
    %c0_i32_1 = arith.constant 0 : i32
    return %c0_i32, %c0_i32_0 : i32, i32
  }
  func.func @transform_2(%arg0: i32) -> (i32, i32) {
    %c0_i32 = arith.constant 0 : i32
    %c0_i32_0 = arith.constant 0 : i32
    %c0_i32_1 = arith.constant 0 : i32
    return %c0_i32, %c0_i32_0 : i32, i32
  }
  func.func @transform_3(%arg0: i32) -> (i32, i32) {
    %c0_i32 = arith.constant 0 : i32
    %c0_i32_0 = arith.constant 0 : i32
    %c0_i32_1 = arith.constant 0 : i32
    return %c0_i32, %c0_i32_0 : i32, i32
  }
  func.func @transform_4(%arg0: i32) -> (i32, i32) {
    %c0_i32 = arith.constant 0 : i32
    %c0_i32_0 = arith.constant 0 : i32
    %c0_i32_1 = arith.constant 0 : i32
    return %c0_i32, %c0_i32_0 : i32, i32
  }
  func.func @transform_5(%arg0: i32) -> (i32, i32) {
    %c0_i32 = arith.constant 0 : i32
    %c0_i32_0 = arith.constant 0 : i32
    return %arg0, %c0_i32 : i32, i32
  }
  func.func @transform_6(%arg0: i32) -> (i32, i32) {
    %c0_i32 = arith.constant 0 : i32
    %c0_i32_0 = arith.constant 0 : i32
    return %arg0, %c0_i32 : i32, i32
  }
  func.func @transform_7(%arg0: i32) -> (i32, i32) {
    %c0_i32 = arith.constant 0 : i32
    %c0_i32_0 = arith.constant 0 : i32
    return %arg0, %c0_i32 : i32, i32
  }
}

</mosaic_0001>

<bundles_post_ra>
// kernel: fused_forward.1
= control target key start
LH: loop header
LB: loop body
LE: loop exit
PB: predicated region body
PF: predicated region fallthrough
CT: control target
= control target key end

     0   :  { %13 = vsyncpa [#allocation3], 0  ;;  %s780_s0 = inlined_call_operand.vmem [shape: bf16[16,32], index: 0, kind: input, shape index: {}]   ;;  %s781_s1 = inlined_call_operand.vmem [shape: bf16[32,128], index: 1, kind: input, shape index: {}]   ;;  %s782_s2 = inlined_call_operand.vmem [shape: f32[1,128], index: 2, kind: input, shape index: {}]   ;;  %s783_s3 = inlined_call_operand.hbm [shape: bf16[128,256], index: 3, kind: input, shape index: {}]   ;;  %s784_s4 = inlined_call_operand.vmem [shape: f32[1,256], index: 4, kind: input, shape index: {}]   ;;  %s785_s5 = inlined_call_operand.vmem [shape: s32[16,2], index: 5, kind: input, shape index: {}]   ;;  %s786_s6 = inlined_call_operand.hbm [shape: f32[16,256], index: 6, kind: output, shape index: {0}]   ;;  %s787_s7 = inlined_call_operand.vmem [shape: f32[1,2], index: 7, kind: output, shape index: {1}]  }
   0x1   :  { %14 = vsyncpa [#allocation4], 0 }
   0x2   :  { %15 = vsyncpa [#allocation5], 0  ;;  %s619_s24 = smov [#allocation2]   ;;  %s557_s28 = scalar_lea.hbm %s783_s3, 2048 }
   0x3   :  { %s27_s25 = sshll.u32 %s619_s24, 4  ;;  %p558_p0 = scmp.ne.s32.totalorder %s783_s3, %s557_s28  ;;  %s28_s25 = int_to_ptr.vmem [resolvable:$true] %s27_s25 }
   0x4   :  { %p561_p1 = scmp.lt.u32.totalorder %s557_s28, %s783_s3 }
   0x6   :  { %p563_p2 = pnand %p561_p1, %p558_p0 }
   0x8   :  { %566 = shalt.err (!%p563_p2)
}
   0x9   :  { %s567_s10 = scalar_lea.vmem %s28_s25, 2048  ;;  %p572_p4 = scmp.lt.s32.totalorder %s28_s25, %s28_s25 }
   0xa   :  { %p568_p3 = scmp.ne.s32.totalorder %s28_s25, %s567_s10  ;;  %p573_p5 = scmp.lt.s32.totalorder %s567_s10, %s567_s10 }
   0xc   :  { %p574_p6 = por %p573_p5, %p572_p4 }
   0xe   :  { %p575_p7 = pnand %p574_p6, %p568_p3 }
  0x10   :  { %578 = shalt.err (!%p575_p7)
}
  0x11   :  { %s620_s11 = smov 128   ;;  %s621_s12 = smov 8  }
  0x12   :  { %33 = dma.hbm_to_vmem [thread:$0]  %s783_s3, 2048, %s28_s25, [#allocation3], %s620_s11, %s620_s11, %s621_s12  }
  0x13   :  { %613 = dma.done.wait [#allocation3], 2048  }
  0x14   :  { %614 = vsyncadd [#allocation3], 4294965248  ;;  %v622_v0 = vmov 0.0   ;;  %vm623_vm0 = vmmov 0   ;;  %v506_v1 = vld [vmem:[%s781_s1] sm:$0xff]   ;;  %v507_v2 = vld [vmem:[%s781_s1 + $0x8] sm:$0xff]   ;;  %v138_v36 = vlaneseq }
  0x15   :  { %478 = vmatprep.subr.bf16.mxu0 %v622_v0  ;;  %482 = vmatprep.mubr.msk.bf16.mxu0 %vm623_vm0, %v622_v0  ;;  %v509_v3 = vld [vmem:[#allocation2 + $0x4] ss:$8 sps:$4 sm:$0xff]   ;;  %v511_v4 = vld [vmem:[#allocation2] ss:$8 sps:$4 sm:$0xff]   ;;  %v512_v6 = vld [vmem:[#allocation2 + $0x14] ss:$8 sps:$4 sm:$0xff]  }
  0x16   :  { %479 = vmatpush3.bf16.msra.mxu0 %v506_v1  ;;  %v508_v5 = vld [vmem:[%s780_s0] sm:$0xff]   ;;  %228 = vmatprep.subr.bf16.mxu1 %v509_v3  ;;  %vm72_vm1 = vcmask 261120   ;;  %v514_v7 = vld [vmem:[#allocation2 + $0x10] ss:$8 sps:$4 sm:$0xff]   ;;  %v518_v10 = vld [vmem:[#allocation2 + $0x34] ss:$8 sps:$4 sm:$0xff]  }
  0x17   :  { %480 = vmatprep.subr.bf16.mxu0 %v622_v0  ;;  %229 = vmatpush1.bf16.msra.mxu1 %v511_v4  ;;  %v515_v8 = vld [vmem:[#allocation2 + $0x24] ss:$8 sps:$4 sm:$0xff]   ;;  %v517_v9 = vld [vmem:[#allocation2 + $0x20] ss:$8 sps:$4 sm:$0xff]   ;;  %v520_v11 = vld [vmem:[#allocation2 + $0x30] ss:$8 sps:$4 sm:$0xff]  }
  0x18   :  { %230 = vmatprep.subr.bf16.mxu1 %v512_v6  ;;  %v521_v12 = vld [vmem:[#allocation2 + $0x44] ss:$8 sps:$4 sm:$0xff]   ;;  %v523_v13 = vld [vmem:[#allocation2 + $0x40] ss:$8 sps:$4 sm:$0xff]   ;;  %v524_v14 = vld [vmem:[#allocation2 + $0x54] ss:$8 sps:$4 sm:$0xff]  }
  0x19   :  { %v526_v15 = vld [vmem:[#allocation2 + $0x50] ss:$8 sps:$4 sm:$0xff]   ;;  %v527_v16 = vld [vmem:[#allocation2 + $0x64] ss:$8 sps:$4 sm:$0xff]   ;;  %v529_v17 = vld [vmem:[#allocation2 + $0x60] ss:$8 sps:$4 sm:$0xff]  }
  0x1a   :  { %481 = vmatpush3.bf16.msra.mxu0 %v507_v2  ;;  %v530_v18 = vld [vmem:[#allocation2 + $0x74] ss:$8 sps:$4 sm:$0xff]   ;;  %v532_v19 = vld [vmem:[#allocation2 + $0x70] ss:$8 sps:$4 sm:$0xff]   ;;  %v624_v20 = vmov 0   ;;  %v698_v21 = vld [vmem:[%s785_s5] sm:$0xff] }
  0x1b   :  { %231 = vmatpush1.bf16.msra.mxu1 %v514_v7  ;;  %260 = vmatprep.mubr.bf16.mxu1 %v624_v20  ;;  %v703_v22 = vld [vmem:[%s785_s5 + $0x8] sm:$0xff]  ;;  %v625_v23 = vmov 1   ;;  %vm304_vm2 = vcmp.gt.s32.totalorder %v698_v21, 0  ;;  %v452_v26 = vld [vmem:[%s782_s2] ss:$0 sm:$0xff]  ;;  %v139_v37 = vshrl.u32 %v138_v36, 7 }
  0x1c   :  { %232 = vmatprep.subr.bf16.mxu1 %v515_v8  ;;  %503 = vset.pattern.permute.xlu0 %v624_v20  ;;  %vm306_vm3 = vcmp.gt.s32.totalorder %v703_v22, 0  ;;  %v709_v24 = vsel %vm304_vm2, %v698_v21, 0  ;;  %v136_v39 = vld [vmem:[%s784_s4] sm:$0x3]  ;;  %v719_v40 = vand.u32 127, %v138_v36  ;;  %vm299_vm14 = vcmp.ne.s32.totalorder %v703_v22, 4294967295 }
  0x1d   :  { %483 = vmatmul.mubr.msk.bf16.vlgmr.msra.gmra.mrb[0].mxu0 %vm72_vm1, %v508_v5  ;;  %502 = vset.pattern.permute.xlu1 %v625_v23  ;;  %v307_v25 = vsel %vm306_vm3, %v703_v22, 0  ;;  %v144_v38 = vsub.s32 1, %v139_v37  ;;  %v140_v41 = vsub.s32 0, %v139_v37  ;;  %vm298_vm15 = vcmp.ne.s32.totalorder %v698_v21, 4294967295  ;;  %s626_s2 = smov 127   ;;  %s627_s4 = smov [#allocation6]  }
  0x1e   :  { %373 = vperm.xlu1 %502, %v709_v24   ;;  %vm349_vm4 = vcmp.lt.s32.totalorder %v719_v40, 8  ;;  %vm275_vm5 = vcmp.lt.s32.totalorder %v719_v40, 4  ;;  %vm334_vm0 = vcmask 7168   ;;  %s425_s25 = sshll.u32 %s627_s4, 4  ;;  %s426_s25 = int_to_ptr.vmem [resolvable:$true] %s425_s25 }
  0x1f   :  { %233 = vmatpush1.bf16.msra.mxu1 %v517_v9  ;;  %v145_v42 = vrot.slane %v136_v39, %v144_v38  ;;  %v141_v44 = vrot.slane %v136_v39, %v140_v41  ;;  %v473_v39 = vsel %vm298_vm15, 1.0, %v622_v0  ;;  %s579_s26 = scalar_lea.vmem %s426_s25, 512  ;;  %p584_p9 = scmp.lt.s32.totalorder %s426_s25, %s426_s25 }
  0x20   :  { %234 = vmatprep.subr.bf16.mxu1 %v518_v10  ;;  %p580_p8 = scmp.ne.s32.totalorder %s426_s25, %s579_s26  ;;  %p585_p10 = scmp.lt.s32.totalorder %s579_s26, %s579_s26 }
  0x22   :  { %376 = vperm.xlu1 %502, %v307_v25   ;;  %p586_p11 = por %p585_p10, %p584_p9 }
  0x23   :  { %235 = vmatpush1.bf16.msra.mxu1 %v520_v11 }
  0x24   :  { %236 = vmatprep.subr.bf16.mxu1 %v521_v12  ;;  %p587_p12 = pnand %p586_p11, %p580_p8 }
  0x26   :  { %504 = vset.pattern.permute.xlu1 %v624_v20 }
  0x27   :  { %237 = vmatpush1.bf16.msra.mxu1 %v523_v13 }
  0x28   :  { %238 = vmatprep.subr.bf16.mxu1 %v524_v14 }
  0x2b   :  { %239 = vmatpush1.bf16.msra.mxu1 %v526_v15 }
  0x2c   :  { %240 = vmatprep.subr.bf16.mxu1 %v527_v16 }
  0x2f   :  { %241 = vmatpush1.bf16.msra.mxu1 %v529_v17 }
  0x30   :  { %242 = vmatprep.subr.bf16.mxu1 %v530_v18 }
  0x33   :  { %243 = vmatpush1.bf16.msra.mxu1 %v532_v19 }
  0x9d   :  { %v374_v56 = vpop.permute.xlu1 %373 }
  0x9e   :  { %vm378_vm6 = vcmp.eq.s32.totalorder %v719_v40, %v374_v56 }
  0x9f   :  { %vm380_vm7 = vmand %vm378_vm6, %vm349_vm4 }
  0xa1   :  { %v377_v58 = vpop.permute.xlu1 %376 }
  0xa2   :  { %vm379_vm10 = vcmp.eq.s32.totalorder %v719_v40, %v377_v58 }
  0xa3   :  { %vm381_vm11 = vmand %vm379_vm10, %vm349_vm4 }
  0xf0   :  { %v110_v27 = vpop.f32.mrb[0].mxu0 }
  0xf1   :  { %v111_v28 = vadd.f32 %v452_v26, %v110_v27  ;;  %v484_v29 = vpop.f32.mrb[1].mxu0 }
  0xf2   :  { %v113_v30 = vpop.f32.mrb[2].mxu0 }
  0xf3   :  { %v114_v31 = vadd.f32 %v452_v26, %v113_v30  ;;  %v485_v32 = vpop.f32.mrb[3].mxu0  ;;  %v117_v33 = vmax.f32 %v111_v28, 0.0 }
  0xf4   :  { %v474_v32 = vsel %vm299_vm14, 1.0, %v622_v0 }
  0xf5   :  { %v118_v34 = vmax.f32 %v114_v31, 0.0 }
  0xf7   :  { %v119_v35 = vpack.c.bf16 %v118_v34, %v117_v33 }
  0xf9   :  { %261 = vmatmul.mubr.bf16.vlgmr.msra.gmra.mrb[0].mxu1 %v119_v35 }
 0x1cc   :  { %v262_v43 = vpop.f32.mrb[0].mxu1 }
 0x1cd   :  { %v264_v45 = vpop.f32.mrb[1].mxu1  ;;  %v727_v53 = vadd.f32 %v262_v43, %v141_v44 }
 0x1ce   :  { %v265_v46 = vadd.f32 %v264_v45, %v145_v42  ;;  %v266_v47 = vpop.f32.mrb[2].mxu1 }
 0x1cf   :  { %v267_v48 = vadd.f32 %v266_v47, %v141_v44  ;;  %v268_v49 = vpop.f32.mrb[3].mxu1  ;;  %v276_v55 = vsel %vm275_vm5, %v727_v53, -1e+30 }
 0x1d0   :  { %v269_v50 = vadd.f32 %v268_v49, %v145_v42  ;;  %v350_v51 = vsel %vm349_vm4, %v265_v46, -1e+30  ;;  %v382_v57 = vsel %vm380_vm7, %v265_v46, 0.0 }
 0x1d1   :  { %352 = vmax.xlane.f32.xlu0 %v350_v51  ;;  %v277_v52 = vsel %vm275_vm5, %v267_v48, -1e+30 }
 0x1d2   :  { %280 = vmax.xlane.f32.xlu1 %v277_v52  ;;  %v351_v54 = vsel %vm349_vm4, %v269_v50, -1e+30  ;;  %v383_v13 = vsel %vm381_vm11, %v269_v50, 0.0 }
 0x1d5   :  { %354 = vmax.xlane.f32.xlu0 %v351_v54 }
 0x1d9   :  { %278 = vmax.xlane.f32.xlu0 %v276_v55 }
 0x1e3   :  { %312 = vperm.xlu1 %504, %v307_v25  }
 0x207   :  { %384 = vadd.xlane.f32.xlu1 %v382_v57 }
 0x25e   :  { %v737_v59 = vpop.xlane.xlu0 %352 }
 0x25f   :  { %v356_v60 = vsub.f32 %v350_v51, %v737_v59  ;;  %v281_v61 = vpop.xlane.xlu1 %280 }
 0x260   :  { %v283_v62 = vsub.f32 %v277_v52, %v281_v61 }
 0x261   :  { %v358_v63 = vmul.f32 1.442695, %v356_v60 }
 0x262   :  { %v286_v1 = vmul.f32 1.442695, %v283_v62  ;;  %v740_v2 = vpop.xlane.xlu0 %354 }
 0x263   :  { %533 = vpow2.f32 %v358_v63  ;;  %v357_v3 = vsub.f32 %v351_v54, %v740_v2  ;;  %v313_v5 = vpop.permute.xlu1 %312 }
 0x264   :  { %535 = vpow2.f32 %v286_v1  ;;  %vm315_vm8 = vcmp.eq.s32.totalorder %v719_v40, %v313_v5 }
 0x265   :  { %v360_v4 = vmul.f32 1.442695, %v357_v3  ;;  %vm317_vm9 = vmand %vm315_vm8, %vm275_vm5 }
 0x266   :  { %v319_v9 = vsel %vm317_vm9, %v267_v48, 0.0  ;;  %v748_v10 = vpop.xlane.xlu0 %278 }
 0x267   :  { %537 = vpow2.f32 %v360_v4  ;;  %v282_v11 = vsub.f32 %v276_v55, %v748_v10 }
 0x269   :  { %v284_v12 = vmul.f32 1.442695, %v282_v11 }
 0x26b   :  { %539 = vpow2.f32 %v284_v12 }
 0x26d   :  { %v534_v6 = vpop.eup %533 }
 0x26e   :  { %v536_v7 = vpop.eup %535  ;;  %362 = vadd.xlane.f32.xlu0 %v534_v6 }
 0x26f   :  { %290 = vadd.xlane.f32.xlu1 %v536_v7 }
 0x271   :  { %v538_v8 = vpop.eup %537 }
 0x272   :  { %364 = vadd.xlane.f32.xlu0 %v538_v8 }
 0x273   :  { %322 = vadd.xlane.f32.xlu1 %v319_v9 }
 0x275   :  { %v540_v14 = vpop.eup %539 }
 0x288   :  { %309 = vperm.xlu0 %503, %v709_v24  }
 0x28c   :  { %505 = vset.pattern.permute.xlu0 %v625_v23 }
 0x294   :  { %v385_v15 = vpop.xlane.xlu1 %384 }
 0x2a7   :  { %386 = vadd.xlane.f32.xlu0 %v383_v13 }
 0x2ab   :  { %288 = vadd.xlane.f32.xlu0 %v540_v14 }
 0x2fb   :  { %v363_v16 = vpop.xlane.xlu0 %362 }
 0x2fc   :  { %541 = vrcp.f32 %v363_v16  ;;  %v291_v17 = vpop.xlane.xlu1 %290 }
 0x2fd   :  { %543 = vrcp.f32 %v291_v17 }
 0x2fe   :  { %545 = vlog2.f32 %v291_v17 }
 0x2ff   :  { %v365_v18 = vpop.xlane.xlu0 %364 }
 0x300   :  { %547 = vrcp.f32 %v365_v18  ;;  %v323_v33 = vpop.xlane.xlu1 %322 }
 0x301   :  { %549 = vlog2.f32 %v363_v16 }
 0x302   :  { %551 = vlog2.f32 %v365_v18 }
 0x306   :  { %v542_v19 = vpop.eup %541 }
 0x307   :  { %v368_v20 = vmul.f32 %v542_v19, %v534_v6  ;;  %v310_v23 = vpop.permute.xlu0 %309  ;;  %v544_v24 = vpop.eup %543 }
 0x308   :  { %vm314_vm12 = vcmp.eq.s32.totalorder %v719_v40, %v310_v23  ;;  %v546_v25 = vpop.eup %545  ;;  %v295_v26 = vmul.f32 %v544_v24, %v536_v7 }
 0x309   :  { %370 = vst [vmem:[#allocation6 + $0x8] sm:$0xff] %v368_v20  ;;  %vm316_vm13 = vmand %vm314_vm12, %vm275_vm5  ;;  %v327_v28 = vmul.f32 0.6931472, %v546_v25 }
 0x30a   :  { %v548_v27 = vpop.eup %547  ;;  %v318_v29 = vsel %vm316_vm13, %v727_v53, 0.0  ;;  %297 = vst [vmem:[#allocation6 + $0x10] sm:$0xff] %v295_v26 }
 0x30b   :  { %v369_v30 = vmul.f32 %v548_v27, %v538_v8  ;;  %320 = vadd.xlane.f32.xlu0 %v318_v29  ;;  %v329_v31 = vadd.f32 %v327_v28, %v281_v61  ;;  %v550_v35 = vpop.eup %549 }
 0x30c   :  { %v389_v37 = vmul.f32 0.6931472, %v550_v35  ;;  %v552_v41 = vpop.eup %551 }
 0x30d   :  { %371 = vst [vmem:[#allocation6 + $0x18] sm:$0xff] %v369_v30  ;;  %v331_v34 = vsub.f32 %v329_v31, %v323_v33  ;;  %v391_v42 = vmul.f32 0.6931472, %v552_v41 }
 0x30e   :  { %v392_v38 = vadd.f32 %v389_v37, %v737_v59 }
 0x30f   :  { %v333_v36 = vmul.f32 %v474_v32, %v331_v34  ;;  %v393_v43 = vadd.f32 %v391_v42, %v740_v2 }
 0x310   :  { %v394_v22 = vsub.f32 %v392_v38, %v385_v15 }
 0x311   :  { %v336_v55 = vsel %vm334_vm0, %v333_v36, 0.0 }
 0x312   :  { %v396_v40 = vmul.f32 %v473_v39, %v394_v22 }
 0x321   :  { %400 = vrot.lane.b32.xlu0 %v396_v40, %s626_s2 }
 0x334   :  { %v387_v44 = vpop.xlane.xlu0 %386 }
 0x335   :  { %v395_v45 = vsub.f32 %v393_v43, %v387_v44 }
 0x337   :  { %v397_v46 = vmul.f32 %v474_v32, %v395_v45 }
 0x338   :  { %v289_v47 = vpop.xlane.xlu0 %288 }
 0x339   :  { %553 = vrcp.f32 %v289_v47  ;;  %402 = vrot.lane.b32.xlu1 %v397_v46, %s626_s2 }
 0x33a   :  { %555 = vlog2.f32 %v289_v47 }
 0x343   :  { %v554_v48 = vpop.eup %553 }
 0x344   :  { %v294_v49 = vmul.f32 %v554_v48, %v540_v14  ;;  %v556_v21 = vpop.eup %555 }
 0x345   :  { %v325_v0 = vmul.f32 0.6931472, %v556_v21 }
 0x346   :  { %296 = vst [vmem:[#allocation6] sm:$0xff] %v294_v49 }
 0x347   :  { %v328_v50 = vadd.f32 %v325_v0, %v748_v10 }
 0x398   :  { %v321_v51 = vpop.xlane.xlu0 %320 }
 0x399   :  { %v330_v52 = vsub.f32 %v328_v50, %v321_v51 }
 0x39b   :  { %v332_v53 = vmul.f32 %v473_v39, %v330_v52 }
 0x39c   :  { %v401_v57 = vpop.permute.xlu0 %400 }
 0x39d   :  { %v335_v54 = vsel %vm334_vm0, %v332_v53, 0.0  ;;  %v406_v59 = vsel %vm334_vm0, %v401_v57, 0.0 }
 0x39e   :  { %v337_v56 = vadd.f32 %v336_v55, %v335_v54 }
 0x3a0   :  { %338 = vadd.xlane.f32.xlu1 %v337_v56 }
 0x3ab   :  { %v403_v58 = vpop.permute.xlu1 %402 }
 0x3ac   :  { %v407_v60 = vsel %vm334_vm0, %v403_v58, 0.0 }
 0x3ad   :  { %v408_v61 = vadd.f32 %v407_v60, %v406_v59 }
 0x3af   :  { %409 = vadd.xlane.f32.xlu0 %v408_v61 }
 0x3b0   :  { %590 = shalt.err (!%p587_p12)
}
 0x3b1   :  { %s591_s29 = scalar_lea.hbm %s786_s6, 512 }
 0x3b2   :  { %p592_p13 = scmp.ne.s32.totalorder %s786_s6, %s591_s29  ;;  %p595_p0 = scmp.lt.u32.totalorder %s591_s29, %s786_s6 }
 0x3b4   :  { %p597_p1 = pnand %p595_p0, %p592_p13 }
 0x3b6   :  { %600 = shalt.err (!%p597_p1)
}
 0x3b7   :  { %s628_s11 = smov 256   ;;  %s629_s12 = smov 16  }
 0x3b8   :  { %431 = dma.vmem_to_hbm [thread:$0]  %s426_s25, 512, %s786_s6, [#allocation4], %s628_s11, %s628_s11, %s629_s12  }
 0x3b9   :  { %s438_s17 = sshll.u32 %s787_s7, 4  ;;  %s439_s17 = int_to_ptr.vmem [resolvable:$true] %s438_s17 }
 0x3ba   :  { %s601_s3 = scalar_lea.vmem %s439_s17, 16  ;;  %p606_p3 = scmp.lt.s32.totalorder %s439_s17, %s439_s17 }
 0x3bb   :  { %p602_p2 = scmp.ne.s32.totalorder %s439_s17, %s601_s3  ;;  %p607_p4 = scmp.lt.s32.totalorder %s601_s3, %s601_s3 }
 0x3bd   :  { %p608_p5 = por %p607_p4, %p606_p3 }
 0x3bf   :  { %p609_p6 = pnand %p608_p5, %p602_p2 }
 0x42d   :  { %v339_v62 = vpop.xlane.xlu1 %338 }
 0x42e   :  { %v340_v63 = vrot.slane %v339_v62, 4 }
 0x430   :  { %v341_v1 = vadd.f32 %v340_v63, %v339_v62 }
 0x432   :  { %v342_v2 = vrot.slane %v341_v1, 2 }
 0x434   :  { %v343_v3 = vadd.f32 %v342_v2, %v341_v1 }
 0x436   :  { %v344_v4 = vrot.slane %v343_v3, 1 }
 0x438   :  { %v345_v5 = vadd.f32 %v344_v4, %v343_v3 }
 0x43a   :  { %486 = vpush %v345_v5 }
 0x43c   :  { %v410_v6 = vpop.xlane.xlu0 %409 }
 0x43d   :  { %v411_v7 = vrot.slane %v410_v6, 4 }
 0x43f   :  { %v412_v8 = vadd.f32 %v411_v7, %v410_v6 }
 0x441   :  { %v413_v9 = vrot.slane %v412_v8, 2 }
 0x443   :  { %v414_v10 = vadd.f32 %v413_v9, %v412_v8 }
 0x445   :  { %v415_v11 = vrot.slane %v414_v10, 1 }
 0x447   :  { %v416_v12 = vadd.f32 %v415_v11, %v414_v10 }
 0x449   :  { %488 = vpush %v416_v12 }
 0x46b   :  { %s487_s15 = spop %486 }
 0x46c   :  { %348 = sst [smem:[#allocation7]] %s487_s15 }
 0x47a   :  { %s489_s18 = spop %488 }
 0x47b   :  { %419 = sst [smem:[#allocation7 + $0x1]] %s489_s18 }
 0x47c   :  { %612 = shalt.err (!%p609_p6)
}
 0x47d   :  { %s630_s19 = smov [#allocation7]  }
 0x47e   :  { %441 = dma.smem_to_vmem %s630_s19, 16, %s439_s17, [#allocation5]  }
 0x47f   :  { %615 = dma.done.wait [#allocation4], 512  }
 0x480   :  { %616 = vsyncadd [#allocation4], 4294966784 }
 0x481   :  { %617 = dma.done.wait [#allocation5], 16  }
 0x482   :  { %618 = vsyncadd [#allocation5], 4294967280 }
 0x483   :  { %448 = sfence }
 0x484   :  { %449 = vsyncpa [#allocation3], 1 }
 0x485   :  { %450 = vsyncpa [#allocation4], 1 }
 0x486   :  { %451 = vsyncpa [#allocation5], 1 }

</bundles_post_ra>
